<compile_context>
chip_gen: v7x
topology: tpu7x:2x2x1
jax: 0.10.0
libtpu: 0.0.40
codegen_flags: <defaults>
</compile_context>

<pallas_src>
import functools

import jax
import jax.numpy as jnp
from jax.experimental import pallas as pl
from jax.experimental.pallas import tpu as pltpu

LANE = 128                          # vreg lane width / MXU column granularity
SUBLANE = 8                         # f32 sublane granularity
TM_MAX = 512                        # max rows per tile (review: tm=512..1024)
VMEM_LIMIT_BYTES = 32 * 1024 * 1024  # raise v5e's 16 MiB scoped default


def _round_up(x: int, m: int) -> int:
    return ((x + m - 1) // m) * m


def _prefer_wide_tiles() -> bool:
    """256-wide N/K tiles for v6e/v7x's 2x256x256 MXU; 128 on v5e (4x128x128)."""
    try:
        kind = jax.devices()[0].device_kind.lower()
        return ("v6" in kind) or ("v7" in kind)
    except Exception:  # defensive: default to the conservative choice
        return False


def _pick_tiles(M, N, K):
    wide = _prefer_wide_tiles()
    m_pad = _round_up(max(M, SUBLANE), SUBLANE)
    if m_pad > TM_MAX:
        tm = TM_MAX                      # multiple of 128 -> always spec-legal
        m_pad = _round_up(M, tm)
    else:
        tm = m_pad                       # single M tile == full (padded) dim
    n_pad = _round_up(N, LANE)
    tn = 256 if (wide and n_pad % 256 == 0) else LANE
    k_pad = _round_up(K, LANE)
    tk = 256 if (wide and k_pad % 256 == 0) else LANE
    return tm, tn, tk, m_pad, n_pad, k_pad


def _pad2d(a, rows, cols):
    r, c = a.shape
    if r == rows and c == cols:
        return a
    return jnp.pad(a, ((0, rows - r), (0, cols - c)))


# ----------------------------------------------------------------------------
# Kernel 1: tiled matmul + bias (+ReLU).  Grid (M/tm, N/tn, K/tk), f32 acc.
# ----------------------------------------------------------------------------
def _matmul_bias_act_kernel(x_ref, w_ref, b_ref, o_ref, acc_ref, *, relu):
    k = pl.program_id(2)

    @pl.when(k == 0)
    def _():
        acc_ref[...] = jnp.zeros_like(acc_ref)

    acc_ref[...] += jnp.dot(x_ref[...], w_ref[...],
                            preferred_element_type=jnp.float32)

    @pl.when(k == pl.num_programs(2) - 1)
    def _():
        y = acc_ref[...] + b_ref[...].astype(jnp.float32)
        if relu:
            y = jnp.maximum(y, 0.0)
        o_ref[...] = y.astype(o_ref.dtype)


def matmul_bias_act(x, w, b, *, relu, compute_dtype=jnp.bfloat16):
    """act(x @ w + b); x:[M,K], w:[K,N], b:[N] or [1,N] -> [M,N] float32."""
    M, K = x.shape
    K2, N = w.shape
    assert K2 == K
    tm, tn, tk, m_pad, n_pad, k_pad = _pick_tiles(M, N, K)

    xp = _pad2d(x, m_pad, k_pad).astype(compute_dtype)
    wp = _pad2d(w, k_pad, n_pad).astype(compute_dtype)
    bp = _pad2d(b.reshape(1, -1), 1, n_pad).astype(jnp.float32)

    grid = (m_pad // tm, n_pad // tn, k_pad // tk)
    cost = pl.CostEstimate(
        flops=2 * m_pad * n_pad * k_pad,
        transcendentals=0,
        bytes_accessed=(xp.size * xp.dtype.itemsize + wp.size * wp.dtype.itemsize
                        + bp.size * 4 + m_pad * n_pad * 4))

    out = pl.pallas_call(
        functools.partial(_matmul_bias_act_kernel, relu=relu),
        grid=grid,
        in_specs=[
            pl.BlockSpec((tm, tk), lambda i, j, k: (i, k)),
            pl.BlockSpec((tk, tn), lambda i, j, k: (k, j)),
            pl.BlockSpec((1, tn), lambda i, j, k: (0, j)),
        ],
        out_specs=pl.BlockSpec((tm, tn), lambda i, j, k: (i, j)),
        out_shape=jax.ShapeDtypeStruct((m_pad, n_pad), jnp.float32),
        scratch_shapes=[pltpu.VMEM((tm, tn), jnp.float32)],
        compiler_params=pltpu.CompilerParams(
            dimension_semantics=("parallel", "parallel", "arbitrary"),
            vmem_limit_bytes=VMEM_LIMIT_BYTES),
        cost_estimate=cost,
    )(xp, wp, bp)
    return out[:M, :N]


# ----------------------------------------------------------------------------
# Kernel 2: conv-as-matmul with the global average pool fused into the
# epilogue.  Only the pooled [NB_pad, C_pad] features ever leave the kernel.
# ----------------------------------------------------------------------------
def _conv_pool_kernel(x_ref, w_ref, b_ref, s_ref, o_ref, acc_ref, pool_ref):
    i = pl.program_id(0)
    j = pl.program_id(1)
    k = pl.program_id(2)
    tn = o_ref.shape[1]
    col = pl.ds(pl.multiple_of(j * tn, LANE), tn)

    @pl.when(k == 0)
    def _():
        acc_ref[...] = jnp.zeros_like(acc_ref)

    @pl.when((i == 0) & (k == 0))
    def _():
        pool_ref[:, col] = jnp.zeros((pool_ref.shape[0], tn), jnp.float32)

    acc_ref[...] += jnp.dot(x_ref[...], w_ref[...],
                            preferred_element_type=jnp.float32)

    @pl.when(k == pl.num_programs(2) - 1)
    def _():
        a = jnp.maximum(acc_ref[...] + b_ref[...].astype(jnp.float32), 0.0)
        # Pooling matmul: S[nb_pad, tm] @ relu(acc+b)[tm, tn]; S rows carry 1/HW
        # at this tile's row positions, so this accumulates the spatial mean.
        pool_ref[:, col] += jnp.dot(s_ref[...], a,
                                    preferred_element_type=jnp.float32)
        o_ref[...] = pool_ref[:, col].astype(o_ref.dtype)


def conv_matmul_pool(patches, w, b, *, n_samples, hw, compute_dtype=jnp.bfloat16):
    """relu(patches @ w + b) followed by a fused per-sample spatial mean.

    patches:[M,K] with M == n_samples*hw rows grouped per sample, w:[K,N],
    b:[N].  Returns pooled features [nb_pad, n_pad] f32 (padded rows/cols = 0).
    """
    M, K = patches.shape
    _, N = w.shape
    assert M == n_samples * hw
    tm, tn, tk, m_pad, n_pad, k_pad = _pick_tiles(M, N, K)
    nb_pad = _round_up(max(n_samples, SUBLANE), SUBLANE)

    xp = _pad2d(patches, m_pad, k_pad).astype(compute_dtype)
    wp = _pad2d(w, k_pad, n_pad).astype(compute_dtype)
    bp = _pad2d(b.reshape(1, -1), 1, n_pad).astype(jnp.float32)

    # Pooling/selection matrix: pooled[s] = (1/hw) * sum of that sample's rows.
    row = jnp.arange(m_pad)
    sample = row // hw
    s = jnp.where((row < M)[None, :]
                  & (sample[None, :] == jnp.arange(nb_pad)[:, None]),
                  1.0 / hw, 0.0).astype(jnp.float32)          # [nb_pad, m_pad]

    grid = (m_pad // tm, n_pad // tn, k_pad // tk)
    cost = pl.CostEstimate(
        flops=2 * m_pad * n_pad * k_pad + 2 * nb_pad * m_pad * n_pad,
        transcendentals=0,
        bytes_accessed=(xp.size * xp.dtype.itemsize + wp.size * wp.dtype.itemsize
                        + bp.size * 4 + s.size * 4 + nb_pad * n_pad * 4))

    pooled = pl.pallas_call(
        _conv_pool_kernel,
        grid=grid,
        in_specs=[
            pl.BlockSpec((tm, tk), lambda i, j, k: (i, k)),
            pl.BlockSpec((tk, tn), lambda i, j, k: (k, j)),
            pl.BlockSpec((1, tn), lambda i, j, k: (0, j)),
            pl.BlockSpec((nb_pad, tm), lambda i, j, k: (0, i)),
        ],
        out_specs=pl.BlockSpec((nb_pad, tn), lambda i, j, k: (0, j)),
        out_shape=jax.ShapeDtypeStruct((nb_pad, n_pad), jnp.float32),
        scratch_shapes=[pltpu.VMEM((tm, tn), jnp.float32),
                        pltpu.VMEM((nb_pad, n_pad), jnp.float32)],
        compiler_params=pltpu.CompilerParams(
            # The pooled accumulation crosses the M (and N) grid axes through a
            # persistent scratch, so keep all axes sequential (no core split).
            dimension_semantics=("arbitrary", "arbitrary", "arbitrary"),
            vmem_limit_bytes=VMEM_LIMIT_BYTES),
        cost_estimate=cost,
    )(xp, wp, bp, s)
    return pooled


# ----------------------------------------------------------------------------
# JAX glue: im2col (patch extraction) and weight-matrix packing
# ----------------------------------------------------------------------------
def im2col(x_nhwc, ksize, stride, padding):
    """x:[N,H,W,C] -> patches:[N*Ho*Wo, ksize*ksize*C] ((kh, kw, c) ordering)."""
    n, h, w, c = x_nhwc.shape
    xp = jnp.pad(x_nhwc, ((0, 0), (padding, padding), (padding, padding), (0, 0)))
    ho = (h + 2 * padding - ksize) // stride + 1
    wo = (w + 2 * padding - ksize) // stride + 1
    cols = []
    for kh in range(ksize):
        for kw in range(ksize):
            cols.append(xp[:, kh:kh + stride * ho:stride,
                           kw:kw + stride * wo:stride, :])
    patches = jnp.concatenate(cols, axis=-1)           # [N, Ho, Wo, K*K*C]
    return patches.reshape(n * ho * wo, ksize * ksize * c), ho, wo


def conv_weight_matrix(w_oihw, *, cin_pad, cout_pad):
    """PyTorch OIHW conv weights -> [kh*kw*cin_pad, cout_pad] (kh,kw,c order)."""
    c_out, c_in, kh, kw = w_oihw.shape
    w_t = jnp.transpose(w_oihw, (2, 3, 1, 0))          # [kh, kw, cin, cout]
    w_t = jnp.pad(w_t, ((0, 0), (0, 0),
                        (0, cin_pad - c_in), (0, cout_pad - c_out)))
    return w_t.reshape(kh * kw * cin_pad, cout_pad)


# ----------------------------------------------------------------------------
# Classifier: parameters + forward
# ----------------------------------------------------------------------------
def init_classifier_params(key, in_channels, n_classes, c1=32, c2=64):
    k1, k2, k3, k4, k5, k6 = jax.random.split(key, 6)
    scale = 0.05
    return {
        "conv1_w": jax.random.normal(k1, (c1, in_channels, 3, 3), jnp.float32) * scale,
        "conv1_b": jax.random.normal(k2, (c1,), jnp.float32) * scale,
        "conv2_w": jax.random.normal(k3, (c2, c1, 3, 3), jnp.float32) * scale,
        "conv2_b": jax.random.normal(k4, (c2,), jnp.float32) * scale,
        "head_w": jax.random.normal(k5, (c2, n_classes), jnp.float32) * scale,
        "head_b": jax.random.normal(k6, (n_classes,), jnp.float32) * scale,
    }


def classifier_forward(params, x_nchw):
    n_classes = params["head_w"].shape[1]
    c1 = params["conv1_w"].shape[0]
    c2 = params["conv2_w"].shape[0]
    c1_pad = _round_up(c1, LANE)
    c2_pad = _round_up(c2, LANE)
    ncls_pad = _round_up(n_classes, LANE)

    # NCHW -> NHWC
    x = jnp.transpose(x_nchw, (0, 2, 3, 1)).astype(jnp.float32)
    nb = x.shape[0]

    # --- conv1: 3x3 s2 p1 + ReLU; output channels kept lane-dense (c1 -> 128,
    #     the padded channels are exactly zero and carried forward).
    w1 = conv_weight_matrix(params["conv1_w"], cin_pad=x.shape[-1], cout_pad=c1_pad)
    b1 = jnp.pad(params["conv1_b"], (0, c1_pad - c1))
    patches1, ho1, wo1 = im2col(x, 3, 2, 1)
    y1 = matmul_bias_act(patches1, w1, b1, relu=True)        # [nb*ho1*wo1, c1_pad]
    y1 = y1.reshape(nb, ho1, wo1, c1_pad)

    # --- conv2: 3x3 s2 p1 + ReLU, with the head's global average pool fused
    #     into the kernel epilogue (feature map never written to HBM).
    w2 = conv_weight_matrix(params["conv2_w"], cin_pad=c1_pad, cout_pad=c2_pad)
    b2 = jnp.pad(params["conv2_b"], (0, c2_pad - c2))
    patches2, ho2, wo2 = im2col(y1, 3, 2, 1)
    pooled = conv_matmul_pool(patches2, w2, b2,
                              n_samples=nb, hw=ho2 * wo2)    # [nb_pad, c2_pad]

    # --- head: Linear(c2 -> n_classes), lane-padded, sliced once at the end.
    wh = jnp.pad(params["head_w"],
                 ((0, c2_pad - c2), (0, ncls_pad - n_classes)))
    bh = jnp.pad(params["head_b"], (0, ncls_pad - n_classes))
    logits = matmul_bias_act(pooled, wh, bh, relu=False)     # [nb_pad, ncls_pad]
    return logits[:nb, :n_classes]


if __name__ == "__main__":
    key = jax.random.PRNGKey(0)
    k_x, k_p = jax.random.split(key)

    batch, in_channels, height, width = 2, 4, 16, 16
    n_classes = 10

    x = jax.random.normal(k_x, (batch, in_channels, height, width), jnp.float32)
    params = init_classifier_params(k_p, in_channels, n_classes)

    fwd = jax.jit(classifier_forward)
    logits = fwd(params, x)
    logits = jax.block_until_ready(logits)

    assert logits.shape == (batch, n_classes), logits.shape
    assert bool(jnp.all(jnp.isfinite(logits)))
    print("KERNEL_OK")
</pallas_src>

<mosaic_0001>
module attributes {stable_mosaic.version = 11 : i64} {
  func.func @_matmul_bias_act_kernel(%arg0: i32, %arg1: i32, %arg2: i32, %arg3: memref<128x128xbf16, #tpu.memory_space<vmem>>, %arg4: memref<128x128xbf16, #tpu.memory_space<vmem>>, %arg5: memref<1x128xf32, #tpu.memory_space<vmem>>, %arg6: memref<128x128xf32, #tpu.memory_space<vmem>>, %arg7: memref<128x128xf32, #tpu.memory_space<vmem>>) attributes {dimension_semantics = [#tpu.dimension_semantics<parallel>, #tpu.dimension_semantics<parallel>, #tpu.dimension_semantics<arbitrary>], iteration_bounds = array<i64: 1, 1, 1>, scalar_prefetch = 0 : i64, scratch_operands = 1 : i64, tpu.core_type = #tpu.core_type<tc>, window_params = [{transform_indices = @transform_0, window_bounds = array<i64: 128, 128>}, {transform_indices = @transform_1, window_bounds = array<i64: 128, 128>}, {transform_indices = @transform_2, window_bounds = array<i64: 1, 128>}, {transform_indices = @transform_3, window_bounds = array<i64: 128, 128>}]} {
    %c0_i32 = arith.constant 0 : i32
    %0 = arith.cmpi eq, %arg2, %c0_i32 : i32
    %1 = arith.extui %0 : i1 to i32
    %c0_i32_0 = arith.constant 0 : i32
    %2 = arith.cmpi ne, %1, %c0_i32_0 : i32
    scf.if %2 {
      %cst_10 = arith.constant 0.000000e+00 : f32
      %12 = vector.broadcast %cst_10 : f32 to vector<128x128xf32>
      %c0_11 = arith.constant 0 : index
      %c0_12 = arith.constant 0 : index
      %13 = vector.load %arg7[%c0_11, %c0_12] : memref<128x128xf32, #tpu.memory_space<vmem>>, vector<128x128xf32>
      tpu.vector_store %arg7[%c0_11, %c0_12], %12 {strides = array<i32>} : memref<128x128xf32, #tpu.memory_space<vmem>>, vector<128x128xf32>,
    } else {
    }
    %c0 = arith.constant 0 : index
    %c0_1 = arith.constant 0 : index
    %3 = vector.load %arg7[%c0, %c0_1] : memref<128x128xf32, #tpu.memory_space<vmem>>, vector<128x128xf32>
    %c0_2 = arith.constant 0 : index
    %c0_3 = arith.constant 0 : index
    %4 = vector.load %arg3[%c0_2, %c0_3] : memref<128x128xbf16, #tpu.memory_space<vmem>>, vector<128x128xbf16>
    %c0_4 = arith.constant 0 : index
    %c0_5 = arith.constant 0 : index
    %5 = vector.load %arg4[%c0_4, %c0_5] : memref<128x128xbf16, #tpu.memory_space<vmem>>, vector<128x128xbf16>
    %cst = arith.constant dense<0.000000e+00> : vector<128x128xf32>
    %6 = tpu.matmul %4, %5, %cst {dimension_numbers = #tpu.dot_dimension_numbers<[1], [0], [0], [1], [0, 0, 1, 1], [], []>} : vector<128x128xbf16>, vector<128x128xbf16>, vector<128x128xf32> -> vector<128x128xf32>
    %7 = arith.addf %3, %6 : vector<128x128xf32>
    %c0_6 = arith.constant 0 : index
    %c0_7 = arith.constant 0 : index
    %8 = vector.load %arg7[%c0_6, %c0_7] : memref<128x128xf32, #tpu.memory_space<vmem>>, vector<128x128xf32>
    tpu.vector_store %arg7[%c0_6, %c0_7], %7 {strides = array<i32>} : memref<128x128xf32, #tpu.memory_space<vmem>>, vector<128x128xf32>,
    %c0_i32_8 = arith.constant 0 : i32
    %9 = arith.cmpi eq, %arg2, %c0_i32_8 : i32
    %10 = arith.extui %9 : i1 to i32
    %c0_i32_9 = arith.constant 0 : i32
    %11 = arith.cmpi ne, %10, %c0_i32_9 : i32
    scf.if %11 {
      %c0_10 = arith.constant 0 : index
      %c0_11 = arith.constant 0 : index
      %12 = vector.load %arg7[%c0_10, %c0_11] : memref<128x128xf32, #tpu.memory_space<vmem>>, vector<128x128xf32>
      %c0_12 = arith.constant 0 : index
      %c0_13 = arith.constant 0 : index
      %13 = vector.load %arg5[%c0_12, %c0_13] : memref<1x128xf32, #tpu.memory_space<vmem>>, vector<1x128xf32>
      %14 = vector.broadcast %13 : vector<1x128xf32> to vector<128x128xf32>
      %15 = arith.addf %12, %14 : vector<128x128xf32>
      %cst_14 = arith.constant 0.000000e+00 : f32
      %16 = vector.broadcast %cst_14 : f32 to vector<128x128xf32>
      %17 = arith.maximumf %15, %16 : vector<128x128xf32>
      %c0_15 = arith.constant 0 : index
      %c0_16 = arith.constant 0 : index
      %18 = vector.load %arg6[%c0_15, %c0_16] : memref<128x128xf32, #tpu.memory_space<vmem>>, vector<128x128xf32>
      tpu.vector_store %arg6[%c0_15, %c0_16], %17 {strides = array<i32>} : memref<128x128xf32, #tpu.memory_space<vmem>>, vector<128x128xf32>,
    } else {
    }
    return
  }
  func.func @transform_0(%arg0: i32, %arg1: i32, %arg2: i32) -> (i32, i32) {
    %c0_i32 = arith.constant 0 : i32
    return %arg0, %arg2 : i32, i32
  }
  func.func @transform_1(%arg0: i32, %arg1: i32, %arg2: i32) -> (i32, i32) {
    %c0_i32 = arith.constant 0 : i32
    return %arg2, %arg1 : i32, i32
  }
  func.func @transform_2(%arg0: i32, %arg1: i32, %arg2: i32) -> (i32, i32) {
    %c0_i32 = arith.constant 0 : i32
    %c0_i32_0 = arith.constant 0 : i32
    return %c0_i32, %arg1 : i32, i32
  }
  func.func @transform_3(%arg0: i32, %arg1: i32, %arg2: i32) -> (i32, i32) {
    %c0_i32 = arith.constant 0 : i32
    return %arg0, %arg1 : i32, i32
  }
}

module attributes {stable_mosaic.version = 11 : i64} {
  func.func @_conv_pool_kernel(%arg0: i32, %arg1: i32, %arg2: i32, %arg3: memref<32x128xbf16, #tpu.memory_space<vmem>>, %arg4: memref<128x128xbf16, #tpu.memory_space<vmem>>, %arg5: memref<1x128xf32, #tpu.memory_space<vmem>>, %arg6: memref<8x32xf32, #tpu.memory_space<vmem>>, %arg7: memref<8x128xf32, #tpu.memory_space<vmem>>, %arg8: memref<32x128xf32, #tpu.memory_space<vmem>>, %arg9: memref<8x128xf32, #tpu.memory_space<vmem>>) attributes {dimension_semantics = [#tpu.dimension_semantics<arbitrary>, #tpu.dimension_semantics<arbitrary>, #tpu.dimension_semantics<arbitrary>], iteration_bounds = array<i64: 1, 1, 9>, scalar_prefetch = 0 : i64, scratch_operands = 2 : i64, tpu.core_type = #tpu.core_type<tc>, window_params = [{transform_indices = @transform_0, window_bounds = array<i64: 32, 128>}, {transform_indices = @transform_1, window_bounds = array<i64: 128, 128>}, {transform_indices = @transform_2, window_bounds = array<i64: 1, 128>}, {transform_indices = @transform_3, window_bounds = array<i64: 8, 32>}, {transform_indices = @transform_4, window_bounds = array<i64: 8, 128>}]} {
    %c128_i32 = arith.constant 128 : i32
    %0 = arith.muli %arg1, %c128_i32 : i32
    %1 = tpu.assume_multiple %0, 128 : i32
    %c0_i32 = arith.constant 0 : i32
    %2 = arith.cmpi eq, %arg2, %c0_i32 : i32
    %3 = arith.extui %2 : i1 to i32
    %c0_i32_0 = arith.constant 0 : i32
    %4 = arith.cmpi ne, %3, %c0_i32_0 : i32
    scf.if %4 {
      %cst_12 = arith.constant 0.000000e+00 : f32
      %19 = vector.broadcast %cst_12 : f32 to vector<32x128xf32>
      %c0_13 = arith.constant 0 : index
      %c0_14 = arith.constant 0 : index
      %20 = vector.load %arg8[%c0_13, %c0_14] : memref<32x128xf32, #tpu.memory_space<vmem>>, vector<32x128xf32>
      tpu.vector_store %arg8[%c0_13, %c0_14], %19 {strides = array<i32>} : memref<32x128xf32, #tpu.memory_space<vmem>>, vector<32x128xf32>,
    } else {
    }
    %c0_i32_1 = arith.constant 0 : i32
    %5 = arith.cmpi eq, %arg0, %c0_i32_1 : i32
    %c0_i32_2 = arith.constant 0 : i32
    %6 = arith.cmpi eq, %arg2, %c0_i32_2 : i32
    %7 = arith.andi %5, %6 : i1
    %8 = arith.extui %7 : i1 to i32
    %c0_i32_3 = arith.constant 0 : i32
    %9 = arith.cmpi ne, %8, %c0_i32_3 : i32
    scf.if %9 {
      %cst_12 = arith.constant 0.000000e+00 : f32
      %19 = vector.broadcast %cst_12 : f32 to vector<8x128xf32>
      %c0_13 = arith.constant 0 : index
      %20 = arith.index_cast %1 : i32 to index
      %21 = vector.load %arg9[%c0_13, %20] : memref<8x128xf32, #tpu.memory_space<vmem>>, vector<8x128xf32>
      tpu.vector_store %arg9[%c0_13, %20], %19 {strides = array<i32>} : memref<8x128xf32, #tpu.memory_space<vmem>>, vector<8x128xf32>,
    } else {
    }
    %c0 = arith.constant 0 : index
    %c0_4 = arith.constant 0 : index
    %10 = vector.load %arg8[%c0, %c0_4] : memref<32x128xf32, #tpu.memory_space<vmem>>, vector<32x128xf32>
    %c0_5 = arith.constant 0 : index
    %c0_6 = arith.constant 0 : index
    %11 = vector.load %arg3[%c0_5, %c0_6] : memref<32x128xbf16, #tpu.memory_space<vmem>>, vector<32x128xbf16>
    %c0_7 = arith.constant 0 : index
    %c0_8 = arith.constant 0 : index
    %12 = vector.load %arg4[%c0_7, %c0_8] : memref<128x128xbf16, #tpu.memory_space<vmem>>, vector<128x128xbf16>
    %cst = arith.constant dense<0.000000e+00> : vector<32x128xf32>
    %13 = tpu.matmul %11, %12, %cst {dimension_numbers = #tpu.dot_dimension_numbers<[1], [0], [0], [1], [0, 0, 1, 1], [], []>} : vector<32x128xbf16>, vector<128x128xbf16>, vector<32x128xf32> -> vector<32x128xf32>
    %14 = arith.addf %10, %13 : vector<32x128xf32>
    %c0_9 = arith.constant 0 : index
    %c0_10 = arith.constant 0 : index
    %15 = vector.load %arg8[%c0_9, %c0_10] : memref<32x128xf32, #tpu.memory_space<vmem>>, vector<32x128xf32>
    tpu.vector_store %arg8[%c0_9, %c0_10], %14 {strides = array<i32>} : memref<32x128xf32, #tpu.memory_space<vmem>>, vector<32x128xf32>,
    %c8_i32 = arith.constant 8 : i32
    %16 = arith.cmpi eq, %arg2, %c8_i32 : i32
    %17 = arith.extui %16 : i1 to i32
    %c0_i32_11 = arith.constant 0 : i32
    %18 = arith.cmpi ne, %17, %c0_i32_11 : i32
    scf.if %18 {
      %c0_12 = arith.constant 0 : index
      %c0_13 = arith.constant 0 : index
      %19 = vector.load %arg8[%c0_12, %c0_13] : memref<32x128xf32, #tpu.memory_space<vmem>>, vector<32x128xf32>
      %c0_14 = arith.constant 0 : index
      %c0_15 = arith.constant 0 : index
      %20 = vector.load %arg5[%c0_14, %c0_15] : memref<1x128xf32, #tpu.memory_space<vmem>>, vector<1x128xf32>
      %21 = vector.broadcast %20 : vector<1x128xf32> to vector<32x128xf32>
      %22 = arith.addf %19, %21 : vector<32x128xf32>
      %cst_16 = arith.constant 0.000000e+00 : f32
      %23 = vector.broadcast %cst_16 : f32 to vector<32x128xf32>
      %24 = arith.maximumf %22, %23 : vector<32x128xf32>
      %c0_17 = arith.constant 0 : index
      %25 = arith.index_cast %1 : i32 to index
      %26 = vector.load %arg9[%c0_17, %25] : memref<8x128xf32, #tpu.memory_space<vmem>>, vector<8x128xf32>
      %c0_18 = arith.constant 0 : index
      %c0_19 = arith.constant 0 : index
      %27 = vector.load %arg6[%c0_18, %c0_19] : memref<8x32xf32, #tpu.memory_space<vmem>>, vector<8x32xf32>
      %cst_20 = arith.constant dense<0.000000e+00> : vector<8x128xf32>
      %28 = tpu.matmul %27, %24, %cst_20 {dimension_numbers = #tpu.dot_dimension_numbers<[1], [0], [0], [1], [0, 0, 1, 1], [], []>} : vector<8x32xf32>, vector<32x128xf32>, vector<8x128xf32> -> vector<8x128xf32>
      %29 = arith.addf %26, %28 : vector<8x128xf32>
      %c0_21 = arith.constant 0 : index
      %30 = arith.index_cast %1 : i32 to index
      %31 = vector.load %arg9[%c0_21, %30] : memref<8x128xf32, #tpu.memory_space<vmem>>, vector<8x128xf32>
      tpu.vector_store %arg9[%c0_21, %30], %29 {strides = array<i32>} : memref<8x128xf32, #tpu.memory_space<vmem>>, vector<8x128xf32>,
      %c0_22 = arith.constant 0 : index
      %32 = arith.index_cast %1 : i32 to index
      %33 = vector.load %arg9[%c0_22, %32] : memref<8x128xf32, #tpu.memory_space<vmem>>, vector<8x128xf32>
      %c0_23 = arith.constant 0 : index
      %c0_24 = arith.constant 0 : index
      %34 = vector.load %arg7[%c0_23, %c0_24] : memref<8x128xf32, #tpu.memory_space<vmem>>, vector<8x128xf32>
      tpu.vector_store %arg7[%c0_23, %c0_24], %33 {strides = array<i32>} : memref<8x128xf32, #tpu.memory_space<vmem>>, vector<8x128xf32>,
    } else {
    }
    return
  }
  func.func @transform_0(%arg0: i32, %arg1: i32, %arg2: i32) -> (i32, i32) {
    %c0_i32 = arith.constant 0 : i32
    return %arg0, %arg2 : i32, i32
  }
  func.func @transform_1(%arg0: i32, %arg1: i32, %arg2: i32) -> (i32, i32) {
    %c0_i32 = arith.constant 0 : i32
    return %arg2, %arg1 : i32, i32
  }
  func.func @transform_2(%arg0: i32, %arg1: i32, %arg2: i32) -> (i32, i32) {
    %c0_i32 = arith.constant 0 : i32
    %c0_i32_0 = arith.constant 0 : i32
    return %c0_i32, %arg1 : i32, i32
  }
  func.func @transform_3(%arg0: i32, %arg1: i32, %arg2: i32) -> (i32, i32) {
    %c0_i32 = arith.constant 0 : i32
    %c0_i32_0 = arith.constant 0 : i32
    return %c0_i32, %arg0 : i32, i32
  }
  func.func @transform_4(%arg0: i32, %arg1: i32, %arg2: i32) -> (i32, i32) {
    %c0_i32 = arith.constant 0 : i32
    %c0_i32_0 = arith.constant 0 : i32
    return %c0_i32, %arg1 : i32, i32
  }
}

module attributes {stable_mosaic.version = 11 : i64} {
  func.func @_matmul_bias_act_kernel(%arg0: i32, %arg1: i32, %arg2: i32, %arg3: memref<8x128xbf16, #tpu.memory_space<vmem>>, %arg4: memref<128x128xbf16, #tpu.memory_space<vmem>>, %arg5: memref<1x128xf32, #tpu.memory_space<vmem>>, %arg6: memref<8x128xf32, #tpu.memory_space<vmem>>, %arg7: memref<8x128xf32, #tpu.memory_space<vmem>>) attributes {dimension_semantics = [#tpu.dimension_semantics<parallel>, #tpu.dimension_semantics<parallel>, #tpu.dimension_semantics<arbitrary>], iteration_bounds = array<i64: 1, 1, 1>, scalar_prefetch = 0 : i64, scratch_operands = 1 : i64, tpu.core_type = #tpu.core_type<tc>, window_params = [{transform_indices = @transform_0, window_bounds = array<i64: 8, 128>}, {transform_indices = @transform_1, window_bounds = array<i64: 128, 128>}, {transform_indices = @transform_2, window_bounds = array<i64: 1, 128>}, {transform_indices = @transform_3, window_bounds = array<i64: 8, 128>}]} {
    %c0_i32 = arith.constant 0 : i32
    %0 = arith.cmpi eq, %arg2, %c0_i32 : i32
    %1 = arith.extui %0 : i1 to i32
    %c0_i32_0 = arith.constant 0 : i32
    %2 = arith.cmpi ne, %1, %c0_i32_0 : i32
    scf.if %2 {
      %cst_10 = arith.constant 0.000000e+00 : f32
      %12 = vector.broadcast %cst_10 : f32 to vector<8x128xf32>
      %c0_11 = arith.constant 0 : index
      %c0_12 = arith.constant 0 : index
      %13 = vector.load %arg7[%c0_11, %c0_12] : memref<8x128xf32, #tpu.memory_space<vmem>>, vector<8x128xf32>
      tpu.vector_store %arg7[%c0_11, %c0_12], %12 {strides = array<i32>} : memref<8x128xf32, #tpu.memory_space<vmem>>, vector<8x128xf32>,
    } else {
    }
    %c0 = arith.constant 0 : index
    %c0_1 = arith.constant 0 : index
    %3 = vector.load %arg7[%c0, %c0_1] : memref<8x128xf32, #tpu.memory_space<vmem>>, vector<8x128xf32>
    %c0_2 = arith.constant 0 : index
    %c0_3 = arith.constant 0 : index
    %4 = vector.load %arg3[%c0_2, %c0_3] : memref<8x128xbf16, #tpu.memory_space<vmem>>, vector<8x128xbf16>
    %c0_4 = arith.constant 0 : index
    %c0_5 = arith.constant 0 : index
    %5 = vector.load %arg4[%c0_4, %c0_5] : memref<128x128xbf16, #tpu.memory_space<vmem>>, vector<128x128xbf16>
    %cst = arith.constant dense<0.000000e+00> : vector<8x128xf32>
    %6 = tpu.matmul %4, %5, %cst {dimension_numbers = #tpu.dot_dimension_numbers<[1], [0], [0], [1], [0, 0, 1, 1], [], []>} : vector<8x128xbf16>, vector<128x128xbf16>, vector<8x128xf32> -> vector<8x128xf32>
    %7 = arith.addf %3, %6 : vector<8x128xf32>
    %c0_6 = arith.constant 0 : index
    %c0_7 = arith.constant 0 : index
    %8 = vector.load %arg7[%c0_6, %c0_7] : memref<8x128xf32, #tpu.memory_space<vmem>>, vector<8x128xf32>
    tpu.vector_store %arg7[%c0_6, %c0_7], %7 {strides = array<i32>} : memref<8x128xf32, #tpu.memory_space<vmem>>, vector<8x128xf32>,
    %c0_i32_8 = arith.constant 0 : i32
    %9 = arith.cmpi eq, %arg2, %c0_i32_8 : i32
    %10 = arith.extui %9 : i1 to i32
    %c0_i32_9 = arith.constant 0 : i32
    %11 = arith.cmpi ne, %10, %c0_i32_9 : i32
    scf.if %11 {
      %c0_10 = arith.constant 0 : index
      %c0_11 = arith.constant 0 : index
      %12 = vector.load %arg7[%c0_10, %c0_11] : memref<8x128xf32, #tpu.memory_space<vmem>>, vector<8x128xf32>
      %c0_12 = arith.constant 0 : index
      %c0_13 = arith.constant 0 : index
      %13 = vector.load %arg5[%c0_12, %c0_13] : memref<1x128xf32, #tpu.memory_space<vmem>>, vector<1x128xf32>
      %14 = vector.broadcast %13 : vector<1x128xf32> to vector<8x128xf32>
      %15 = arith.addf %12, %14 : vector<8x128xf32>
      %c0_14 = arith.constant 0 : index
      %c0_15 = arith.constant 0 : index
      %16 = vector.load %arg6[%c0_14, %c0_15] : memref<8x128xf32, #tpu.memory_space<vmem>>, vector<8x128xf32>
      tpu.vector_store %arg6[%c0_14, %c0_15], %15 {strides = array<i32>} : memref<8x128xf32, #tpu.memory_space<vmem>>, vector<8x128xf32>,
    } else {
    }
    return
  }
  func.func @transform_0(%arg0: i32, %arg1: i32, %arg2: i32) -> (i32, i32) {
    %c0_i32 = arith.constant 0 : i32
    return %arg0, %arg2 : i32, i32
  }
  func.func @transform_1(%arg0: i32, %arg1: i32, %arg2: i32) -> (i32, i32) {
    %c0_i32 = arith.constant 0 : i32
    return %arg2, %arg1 : i32, i32
  }
  func.func @transform_2(%arg0: i32, %arg1: i32, %arg2: i32) -> (i32, i32) {
    %c0_i32 = arith.constant 0 : i32
    %c0_i32_0 = arith.constant 0 : i32
    return %c0_i32, %arg1 : i32, i32
  }
  func.func @transform_3(%arg0: i32, %arg1: i32, %arg2: i32) -> (i32, i32) {
    %c0_i32 = arith.constant 0 : i32
    return %arg0, %arg1 : i32, i32
  }
}

</mosaic_0001>

<bundles_post_ra>
// kernel: classifier_forward.3
= control target key start
LH: loop header
LB: loop body
LE: loop exit
PB: predicated region body
PF: predicated region fallthrough
CT: control target
= control target key end

     0   :  { %s602_s1 = inlined_call_operand.vmem [shape: bf16[128,128], index: 1, kind: input, shape index: {}]   ;;  %s603_s0 = inlined_call_operand.vmem [shape: bf16[128,128], index: 0, kind: input, shape index: {}]   ;;  %s604_s2 = inlined_call_operand.vmem [shape: f32[1,128], index: 2, kind: input, shape index: {}]   ;;  %s605_s3 = inlined_call_operand.vmem [shape: f32[128,128], index: 3, kind: output, shape index: {}]  }
   0x1   :  { %v467_v0 = vld [vmem:[%s602_s1] sm:$0xff]   ;;  %v468_v1 = vld [vmem:[%s602_s1 + $0x8] sm:$0xff]   ;;  %v469_v2 = vld [vmem:[%s602_s1 + $0x10] sm:$0xff]  }
   0x2   :  { %419 = vmatprep.subr.bf16.mxu0 %v467_v0  ;;  %451 = vmatprep.subr.bf16.mxu1 %v467_v0  ;;  %v470_v3 = vld [vmem:[%s602_s1 + $0x18] sm:$0xff]   ;;  %v475_v4 = vld [vmem:[%s603_s0] sm:$0xff]   ;;  %v472_v7 = vld [vmem:[%s602_s1 + $0x28] sm:$0xff]  }
   0x3   :  { %420 = vmatpush3.bf16.msra.mxu0 %v467_v0  ;;  %459 = vmatpush3.bf16.msra.mxu1 %v467_v0  ;;  %v476_v5 = vld [vmem:[%s603_s0 + $0x20] sm:$0xff]   ;;  %v473_v8 = vld [vmem:[%s602_s1 + $0x30] sm:$0xff]   ;;  %v474_v9 = vld [vmem:[%s602_s1 + $0x38] sm:$0xff]  }
   0x4   :  { %421 = vmatprep.subr.bf16.mxu0 %v468_v1  ;;  %452 = vmatprep.subr.bf16.mxu1 %v468_v1  ;;  %v471_v6 = vld [vmem:[%s602_s1 + $0x20] sm:$0xff]   ;;  %v477_v10 = vld [vmem:[%s603_s0 + $0x8] sm:$0xff]   ;;  %v479_v12 = vld [vmem:[%s603_s0 + $0x10] sm:$0xff]  }
   0x5   :  { %435 = vmatprep.mubr.bf16.mxu0 %v475_v4  ;;  %443 = vmatprep.mubr.bf16.mxu1 %v476_v5  ;;  %v478_v11 = vld [vmem:[%s603_s0 + $0x28] sm:$0xff]   ;;  %v480_v13 = vld [vmem:[%s603_s0 + $0x30] sm:$0xff]   ;;  %v481_v14 = vld [vmem:[%s603_s0 + $0x18] sm:$0xff]  }
   0x6   :  { %v482_v15 = vld [vmem:[%s603_s0 + $0x38] sm:$0xff]   ;;  %v402_v16 = vld [vmem:[%s604_s2] ss:$0 sm:$0xff] }
   0x7   :  { %422 = vmatpush3.bf16.msra.mxu0 %v468_v1  ;;  %460 = vmatpush3.bf16.msra.mxu1 %v468_v1 }
   0x8   :  { %423 = vmatprep.subr.bf16.mxu0 %v469_v2  ;;  %453 = vmatprep.subr.bf16.mxu1 %v469_v2 }
   0xb   :  { %424 = vmatpush3.bf16.msra.mxu0 %v469_v2  ;;  %461 = vmatpush3.bf16.msra.mxu1 %v469_v2 }
   0xc   :  { %425 = vmatprep.subr.bf16.mxu0 %v470_v3  ;;  %454 = vmatprep.subr.bf16.mxu1 %v470_v3 }
   0xf   :  { %426 = vmatpush3.bf16.msra.mxu0 %v470_v3  ;;  %462 = vmatpush3.bf16.msra.mxu1 %v470_v3 }
  0x10   :  { %427 = vmatprep.subr.bf16.mxu0 %v471_v6  ;;  %455 = vmatprep.subr.bf16.mxu1 %v471_v6 }
  0x13   :  { %428 = vmatpush3.bf16.msra.mxu0 %v471_v6  ;;  %463 = vmatpush3.bf16.msra.mxu1 %v471_v6 }
  0x14   :  { %429 = vmatprep.subr.bf16.mxu0 %v472_v7  ;;  %456 = vmatprep.subr.bf16.mxu1 %v472_v7 }
  0x17   :  { %430 = vmatpush3.bf16.msra.mxu0 %v472_v7  ;;  %464 = vmatpush3.bf16.msra.mxu1 %v472_v7 }
  0x18   :  { %431 = vmatprep.subr.bf16.mxu0 %v473_v8  ;;  %457 = vmatprep.subr.bf16.mxu1 %v473_v8 }
  0x1b   :  { %432 = vmatpush3.bf16.msra.mxu0 %v473_v8  ;;  %465 = vmatpush3.bf16.msra.mxu1 %v473_v8 }
  0x1c   :  { %433 = vmatprep.subr.bf16.mxu0 %v474_v9  ;;  %458 = vmatprep.subr.bf16.mxu1 %v474_v9 }
  0x1f   :  { %434 = vmatpush3.bf16.msra.mxu0 %v474_v9  ;;  %466 = vmatpush3.bf16.msra.mxu1 %v474_v9 }
  0x22   :  { %436 = vmatmul.mubr.bf16.vlgmr.msra.gmra.mrb[0].mxu0 %v477_v10  ;;  %444 = vmatmul.mubr.bf16.vlgmr.msra.gmra.mrb[0].mxu1 %v478_v11 }
  0x23   :  { %439 = vmatprep.mubr.bf16.mxu0 %v479_v12  ;;  %447 = vmatprep.mubr.bf16.mxu1 %v480_v13 }
  0x2a   :  { %440 = vmatmul.mubr.bf16.gmra.mrb[4].mxu0 %v481_v14  ;;  %448 = vmatmul.mubr.bf16.gmra.mrb[4].mxu1 %v482_v15 }
  0xf5   :  { %v437_v17 = vpop.f32.mrb[0].mxu0  ;;  %v445_v18 = vpop.f32.mrb[0].mxu1 }
  0xf6   :  { %v336_v19 = vadd.f32 %v437_v17, %v402_v16  ;;  %v344_v20 = vadd.f32 %v445_v18, %v402_v16  ;;  %v213_v21 = vpop.f32.mrb[1].mxu0  ;;  %v245_v22 = vpop.f32.mrb[1].mxu1 }
  0xf7   :  { %v334_v23 = vadd.f32 %v402_v16, %v213_v21  ;;  %v342_v24 = vadd.f32 %v402_v16, %v245_v22  ;;  %v438_v25 = vpop.f32.mrb[2].mxu0  ;;  %v446_v26 = vpop.f32.mrb[2].mxu1 }
  0xf8   :  { %v352_v27 = vmax.f32 %v336_v19, 0.0  ;;  %v360_v28 = vmax.f32 %v344_v20, 0.0  ;;  %v337_v29 = vadd.f32 %v438_v25, %v402_v16  ;;  %v345_v30 = vadd.f32 %v446_v26, %v402_v16  ;;  %v216_v31 = vpop.f32.mrb[3].mxu0  ;;  %v248_v32 = vpop.f32.mrb[3].mxu1 }
  0xf9   :  { %v350_v33 = vmax.f32 %v334_v23, 0.0  ;;  %v358_v34 = vmax.f32 %v342_v24, 0.0  ;;  %v335_v35 = vadd.f32 %v402_v16, %v216_v31  ;;  %v343_v36 = vadd.f32 %v402_v16, %v248_v32 }
  0xfa   :  { %368 = vst [vmem:[%s605_s3 + $0x10] sm:$0xff] %v352_v27  ;;  %376 = vst [vmem:[%s605_s3 + $0x50] sm:$0xff] %v360_v28  ;;  %v353_v37 = vmax.f32 %v337_v29, 0.0  ;;  %v361_v38 = vmax.f32 %v345_v30, 0.0 }
  0xfb   :  { %366 = vst [vmem:[%s605_s3] sm:$0xff] %v350_v33  ;;  %374 = vst [vmem:[%s605_s3 + $0x40] sm:$0xff] %v358_v34  ;;  %v351_v39 = vmax.f32 %v335_v35, 0.0  ;;  %v359_v40 = vmax.f32 %v343_v36, 0.0 }
  0xfc   :  { %369 = vst [vmem:[%s605_s3 + $0x18] sm:$0xff] %v353_v37  ;;  %377 = vst [vmem:[%s605_s3 + $0x58] sm:$0xff] %v361_v38 }
  0xfd   :  { %367 = vst [vmem:[%s605_s3 + $0x8] sm:$0xff] %v351_v39  ;;  %375 = vst [vmem:[%s605_s3 + $0x48] sm:$0xff] %v359_v40  ;;  %v441_v41 = vpop.f32.mrb[4].mxu0  ;;  %v449_v42 = vpop.f32.mrb[4].mxu1 }
  0xfe   :  { %v340_v43 = vadd.f32 %v441_v41, %v402_v16  ;;  %v348_v44 = vadd.f32 %v449_v42, %v402_v16  ;;  %v229_v45 = vpop.f32.mrb[5].mxu0  ;;  %v261_v46 = vpop.f32.mrb[5].mxu1 }
  0xff   :  { %v338_v47 = vadd.f32 %v402_v16, %v229_v45  ;;  %v346_v48 = vadd.f32 %v402_v16, %v261_v46  ;;  %v442_v49 = vpop.f32.mrb[6].mxu0  ;;  %v450_v50 = vpop.f32.mrb[6].mxu1 }
 0x100   :  { %v356_v51 = vmax.f32 %v340_v43, 0.0  ;;  %v364_v52 = vmax.f32 %v348_v44, 0.0  ;;  %v341_v53 = vadd.f32 %v442_v49, %v402_v16  ;;  %v349_v54 = vadd.f32 %v450_v50, %v402_v16  ;;  %v232_v55 = vpop.f32.mrb[7].mxu0  ;;  %v264_v56 = vpop.f32.mrb[7].mxu1 }
 0x101   :  { %v354_v57 = vmax.f32 %v338_v47, 0.0  ;;  %v362_v58 = vmax.f32 %v346_v48, 0.0  ;;  %v339_v59 = vadd.f32 %v402_v16, %v232_v55  ;;  %v347_v60 = vadd.f32 %v402_v16, %v264_v56 }
 0x102   :  { %372 = vst [vmem:[%s605_s3 + $0x30] sm:$0xff] %v356_v51  ;;  %380 = vst [vmem:[%s605_s3 + $0x70] sm:$0xff] %v364_v52  ;;  %v357_v61 = vmax.f32 %v341_v53, 0.0  ;;  %v365_v62 = vmax.f32 %v349_v54, 0.0 }
 0x103   :  { %370 = vst [vmem:[%s605_s3 + $0x20] sm:$0xff] %v354_v57  ;;  %378 = vst [vmem:[%s605_s3 + $0x60] sm:$0xff] %v362_v58  ;;  %v355_v63 = vmax.f32 %v339_v59, 0.0  ;;  %v363_v0 = vmax.f32 %v347_v60, 0.0 }
 0x104   :  { %373 = vst [vmem:[%s605_s3 + $0x38] sm:$0xff] %v357_v61  ;;  %381 = vst [vmem:[%s605_s3 + $0x78] sm:$0xff] %v365_v62 }
 0x105   :  { %371 = vst [vmem:[%s605_s3 + $0x28] sm:$0xff] %v355_v63  ;;  %379 = vst [vmem:[%s605_s3 + $0x68] sm:$0xff] %v363_v0 }

// kernel: classifier_forward.4
= control target key start
LH: loop header
LB: loop body
LE: loop exit
PB: predicated region body
PF: predicated region fallthrough
CT: control target
= control target key end

     0   :  { %s925_s15 = smov 0   ;;  %s927_s16 = smov 0   ;;  %s1019_s0 = inlined_call_operand.vmem [shape: bf16[32,1152], index: 0, kind: input, shape index: {}]   ;;  %s1020_s1 = inlined_call_operand.vmem [shape: bf16[1152,128], index: 1, kind: input, shape index: {}]   ;;  %s1021_s2 = inlined_call_operand.vmem [shape: f32[1,128], index: 2, kind: input, shape index: {}]   ;;  %s1022_s3 = inlined_call_operand.vmem [shape: f32[8,32], index: 3, kind: input, shape index: {}]   ;;  %s1023_s4 = inlined_call_operand.vmem [shape: f32[8,128], index: 4, kind: output, shape index: {}]  }
   0x1   :  { %s929_s17 = smov 0   ;;  %s931_s18 = smov 0  }
   0x2   :  { %s933_s19 = smov 0  }
   0x3 LB: > { %s26_s20 = sadd.s32 1, %s889_s18  ;;  %p49_p1 = scmp.ne.s32.totalorder %s881_s16, %s877_s15  ;;  %s893_s19 = sphi %s933_s19, %s14_s19   ;;  %s889_s18 = sphi %s931_s18, %s1027_s18   ;;  %s885_s17 = sphi %s929_s17, %s1026_s17   ;;  %s881_s16 = sphi %s927_s16, %s1025_s16   ;;  %s877_s15 = sphi %s925_s15, %s1024_s15  }
   0x4   : > { %p27_p0 = scmp.ge.s32.totalorder %s26_s20, 9  ;;  %p50_p2 = scmp.eq.s32.totalorder %s893_s19, 0 }
   0x5   : > { %s42_s22 = sadd.s32 1, %s881_s16  ;;  %p722_p5 = scmp.ge.s32.totalorder %s893_s19, 9 }
   0x6   : > { %s1029_s20 = smov (%p27_p0, %s26_s20), 0  ;;  %p51_p3 = por %p50_p2, %p49_p1 }
   0x7   : > { %s38_s21 = ssub.s32 %s889_s18, %s1029_s20  ;;  %194 = sbr.rel (%p722_p5) target bundleno = 21 (0x15), region = 24 }
   0x8   : > { %p40_p4 = scmp.eq.s32.totalorder %s38_s21, 0 }
   0xa   : > { %s960_s23 = scalar_select %p40_p4, %s881_s16, %s42_s22  }
   0xe   : > { %197 = sbr.rel (!%p51_p3) target bundleno = 21 (0x15), region = 28  ;;  %s199_s24 = sand.u32 (%p51_p3), 1, %s881_s16  }
   0xf   : > { %s724_s25 = sshll.u32 (%p51_p3), %s889_s18, 2  ;;  %s723_s26 = sshll.u32 (%p51_p3), %s199_s24, 4 }
  0x10   : > { %s206_s29 = scalar_lea.vmem (%p51_p3), %s1019_s0, %s724_s25  ;;  %s201_s30 = scalar_lea.vmem (%p51_p3), [#allocation4], %s723_s26 }
  0x11   : > { %v222_v0 = vld [vmem:[%s206_s29] sm:$0xf] (%p51_p3)  ;;  %v224_v1 = vld [vmem:[%s206_s29 + $0x24] sm:$0xf] (%p51_p3)  ;;  %v226_v2 = vld [vmem:[%s206_s29 + $0x48] sm:$0xf] (%p51_p3) }
  0x12   : > { %223 = vst [vmem:[%s201_s30] sm:$0xf] (%p51_p3), %v222_v0  ;;  %225 = vst [vmem:[%s201_s30 + $0x4] sm:$0xf] (%p51_p3), %v224_v1  ;;  %v228_v3 = vld [vmem:[%s206_s29 + $0x6c] sm:$0xf] (%p51_p3) }
  0x13   : > { %227 = vst [vmem:[%s201_s30 + $0x8] sm:$0xf] (%p51_p3), %v226_v2  ;;  %229 = vst [vmem:[%s201_s30 + $0xc] sm:$0xf] (%p51_p3), %v228_v3 }
  0x15 PF: > { %p725_p6 = scmp.ge.s32.totalorder %s893_s19, 1  ;;  %p271_p7 = scmp.lt.s32.totalorder %s893_s19, 10 }
  0x17   : > { %p272_p8 = pnand %p725_p6, %p271_p7 }
  0x18   : > { %s278_s5 = sand.u32 (!%p272_p8), 1, %s877_s15   ;;  %s727_s6 = sshll.u32 (!%p272_p8), %s885_s17, 4 }
  0x19   : > { %275 = sbr.rel (%p272_p8) target bundleno = 532 (0x214), region = 73  ;;  %s972_s7 = sshll.u32 (!%p272_p8), %s278_s5, 4 }
  0x1a   : > { %p319_p9 = scmp.lt.s32.totalorder (!%p272_p8), %s727_s6, 143  ;;  %p340_p10 = scmp.eq.s32.totalorder (!%p272_p8), %s885_s17, 0 }
  0x1b   : > { %s280_s12 = scalar_lea.vmem (!%p272_p8), [#allocation4], %s972_s7  ;;  %p729_p11 = scmp.ne.s32.totalorder (!%p272_p8), %s885_s17, 0 }
  0x20   : > { %s1031_s6 = smov (!%p319_p9, %s727_s6), 143  ;;  %343 = sbr.rel (%p729_p11) target bundleno = 39 (0x27), region = 81 }
  0x21   : > { %s728_s8 = sshll.u32 %s1031_s6, 2  ;;  %v895_v4 = vmov (!%p729_p11), 0.0  }
  0x22   : > { %s978_s11 = scalar_lea.vmem %s1020_s1, %s728_s8  ;;  %344 = vst [vmem:[#allocation2] sm:$0xff] (!%p729_p11), %v895_v4  ;;  %345 = vst [vmem:[#allocation2 + $0x8] sm:$0xff] (!%p729_p11), %v895_v4 }
  0x23   : > { %346 = vst [vmem:[#allocation2 + $0x10] sm:$0xff] (!%p729_p11), %v895_v4  ;;  %347 = vst [vmem:[#allocation2 + $0x18] sm:$0xff] (!%p729_p11), %v895_v4 }
  0x27 PF: > { %352 = sbr.rel (!%p340_p10) target bundleno = 46 (0x2e), region = 85  ;;  %v896_v5 = vmov (%p340_p10), 0.0  }
  0x28   : > { %356 = vst [vmem:[#allocation3] sm:$0xff] (%p340_p10), %v896_v5 }
  0x2e PF: > { %v845_v6 = vld [vmem:[%s978_s11] sm:$0xff]   ;;  %v846_v7 = vld [vmem:[%s978_s11 + $0x8] sm:$0xff]   ;;  %v847_v8 = vld [vmem:[%s978_s11 + $0x10] sm:$0xff]   ;;  %p741_p12 = scmp.ne.s32.totalorder %s885_s17, 8 }
  0x2f   : > { %763 = vmatprep.subr.bf16.mxu0 %v845_v6  ;;  %v848_v9 = vld [vmem:[%s978_s11 + $0x18] sm:$0xff]   ;;  %v849_v11 = vld [vmem:[%s978_s11 + $0x20] sm:$0xff]   ;;  %v850_v12 = vld [vmem:[%s978_s11 + $0x28] sm:$0xff]   ;;  %v897_v31 = vmov (!%p741_p12), 0.0|0.0   ;;  %vm898_vm0 = vmmov (!%p741_p12), 0   ;;  %v899_v38 = vmov (!%p741_p12), 0.0  }
  0x30   : > { %764 = vmatpush3.bf16.msra.mxu0 %v845_v6  ;;  %v853_v10 = vld [vmem:[%s280_s12] sm:$0xff]   ;;  %v851_v13 = vld [vmem:[%s978_s11 + $0x30] sm:$0xff]   ;;  %v357_v17 = vld [vmem:[#allocation2] sm:$0xff]  ;;  %vm526_vm1 = vcmask (!%p741_p12), 261120  }
  0x31   : > { %765 = vmatprep.subr.bf16.mxu0 %v846_v7  ;;  %779 = vmatprep.mubr.bf16.mxu0 %v853_v10  ;;  %v852_v14 = vld [vmem:[%s978_s11 + $0x38] sm:$0xff]   ;;  %v854_v15 = vld [vmem:[%s280_s12 + $0x8] sm:$0xff]   ;;  %v358_v22 = vld [vmem:[#allocation2 + $0x8] sm:$0xff] }
  0x32   : > { %v359_v16 = vld [vmem:[#allocation2 + $0x10] sm:$0xff]  ;;  %v360_v19 = vld [vmem:[#allocation2 + $0x18] sm:$0xff]  ;;  %v742_v30 = vld [vmem:[%s1021_s2] ss:$0 sm:$0xff] (!%p741_p12) }
  0x33   : > { %v525_v45 = vld [vmem:[%s1022_s3] sm:$0xff] (!%p741_p12) }
  0x34   : > { %766 = vmatpush3.bf16.msra.mxu0 %v846_v7  ;;  %v524_v46 = vld [vmem:[#allocation3] sm:$0xff] (!%p741_p12) }
  0x35   : > { %767 = vmatprep.subr.bf16.mxu0 %v847_v8 }
  0x38   : > { %768 = vmatpush3.bf16.msra.mxu0 %v847_v8 }
  0x39   : > { %769 = vmatprep.subr.bf16.mxu0 %v848_v9 }
  0x3c   : > { %770 = vmatpush3.bf16.msra.mxu0 %v848_v9 }
  0x3d   : > { %771 = vmatprep.subr.bf16.mxu0 %v849_v11 }
  0x40   : > { %772 = vmatpush3.bf16.msra.mxu0 %v849_v11 }
  0x41   : > { %773 = vmatprep.subr.bf16.mxu0 %v850_v12 }
  0x44   : > { %774 = vmatpush3.bf16.msra.mxu0 %v850_v12 }
  0x45   : > { %775 = vmatprep.subr.bf16.mxu0 %v851_v13 }
  0x48   : > { %776 = vmatpush3.bf16.msra.mxu0 %v851_v13 }
  0x49   : > { %777 = vmatprep.subr.bf16.mxu0 %v852_v14 }
  0x4c   : > { %778 = vmatpush3.bf16.msra.mxu0 %v852_v14 }
  0x4d   : > { %794 = vmatprep.subr.bf16.mxu0 (!%p741_p12), %v897_v31 }
  0x4f   : > { %780 = vmatmul.mubr.bf16.vlgmr.msra.gmra.mrb[0].mxu0 %v854_v15 }
  0x50   : > { %791 = vmatprep.mubr.msk.f32.mxu0 (!%p741_p12), %vm898_vm0, %v899_v38 }
 0x122   : > { %v781_v18 = vpop.f32.mrb[0].mxu0  ;;  %501 = sbr.rel (%p741_p12) target bundleno = 532 (0x214), region = 89 }
 0x123   : > { %v492_v20 = vadd.f32 %v781_v18, %v359_v16  ;;  %v475_v21 = vpop.f32.mrb[1].mxu0 }
 0x124   : > { %v490_v23 = vadd.f32 %v475_v21, %v357_v17  ;;  %v782_v24 = vpop.f32.mrb[2].mxu0 }
 0x125   : > { %496 = vst [vmem:[#allocation2 + $0x10] sm:$0xff] %v492_v20  ;;  %v493_v25 = vadd.f32 %v782_v24, %v360_v19  ;;  %v478_v26 = vpop.f32.mrb[3].mxu0 }
 0x126   : > { %494 = vst [vmem:[#allocation2] sm:$0xff] %v490_v23  ;;  %v491_v27 = vadd.f32 %v478_v26, %v358_v22 }
 0x127   : > { %497 = vst [vmem:[#allocation2 + $0x18] sm:$0xff] %v493_v25 }
 0x128   : > { %495 = vst [vmem:[#allocation2 + $0x8] sm:$0xff] %v491_v27 }
 0x12c   : > { %v504_v34 = vld [vmem:[#allocation2 + $0x10] sm:$0xff] }
 0x12d   : > { %v502_v28 = vld [vmem:[#allocation2] sm:$0xff]  ;;  %v515_v36 = vadd.f32 %v742_v30, %v504_v34 }
 0x12e   : > { %v513_v32 = vadd.f32 %v742_v30, %v502_v28  ;;  %v505_v35 = vld [vmem:[#allocation2 + $0x18] sm:$0xff] }
 0x12f   : > { %v503_v29 = vld [vmem:[#allocation2 + $0x8] sm:$0xff]  ;;  %v516_v37 = vadd.f32 %v742_v30, %v505_v35  ;;  %v519_v41 = vmax.f32 %v515_v36, 0.0 }
 0x130   : > { %v514_v33 = vadd.f32 %v742_v30, %v503_v29  ;;  %v517_v39 = vmax.f32 %v513_v32, 0.0 }
 0x131   : > { %v520_v42 = vmax.f32 %v516_v37, 0.0 }
 0x132   : > { %v518_v40 = vmax.f32 %v514_v33, 0.0 }
 0x133   : > { %v798_v44 = vpack.c.bf16 %v520_v42, %v519_v41 }
 0x134   : > { %v795_v43 = vpack.c.bf16 %v518_v40, %v517_v39 }
 0x136   : > { %796 = vmatpush3.bf16.msra.mxu0 %v795_v43 }
 0x137   : > { %797 = vmatprep.subr.bf16.mxu0 %v897_v31 }
 0x13a   : > { %799 = vmatpush3.bf16.msra.mxu0 %v798_v44 }
 0x13d   : > { %792 = vmatmul.mubr.msk.f32.vlgmr.msra.gmra.mrb[0].mxu0 %vm526_vm1, %v525_v45 }
 0x210   : > { %v596_v47 = vpop.f32.mrb[0].mxu0 }
 0x211   : > { %v600_v48 = vadd.f32 %v596_v47, %v524_v46  ;;  %v793_v49 = vpop.f32.mrb[1].mxu0 }
 0x213   : > { %601 = vst [vmem:[#allocation3] sm:$0xff] %v600_v48  ;;  %603 = vst [vmem:[%s1023_s4] sm:$0xff] %v600_v48 }
 0x214 PF: > { %s14_s19 = sadd.s32 1, %s893_s19   ;;  %s1024_s15 = smov %s881_s16 }
 0x215   : > { %p11_p13 = scmp.ge.s32.totalorder %s14_s19, 11   ;;  %s1025_s16 = smov %s960_s23 }
 0x216   : > { %s1026_s17 = smov %s889_s18  ;;  %s1027_s18 = smov %s1029_s20 }
 0x217   :  { %13 = sbr.rel (!%p11_p13) target bundleno = 3 (0x3), region = 135 }

// kernel: classifier_forward.5
= control target key start
LH: loop header
LB: loop body
LE: loop exit
PB: predicated region body
PF: predicated region fallthrough
CT: control target
= control target key end

     0   :  { %v193_v0 = vmov 0.0   ;;  %vm194_vm0 = vmmov 0   ;;  %s248_s1 = inlined_call_operand.vmem [shape: bf16[128,128], index: 1, kind: input, shape index: {}]   ;;  %s249_s0 = inlined_call_operand.vmem [shape: bf16[8,128], index: 0, kind: input, shape index: {}]   ;;  %s250_s2 = inlined_call_operand.vmem [shape: f32[1,128], index: 2, kind: input, shape index: {}]   ;;  %s251_s3 = inlined_call_operand.vmem [shape: f32[8,128], index: 3, kind: output, shape index: {}]  }
   0x1   :  { %163 = vmatprep.subr.bf16.mxu0 %v193_v0  ;;  %v185_v1 = vld [vmem:[%s248_s1] sm:$0xff]   ;;  %179 = vmatprep.mubr.msk.bf16.mxu0 %vm194_vm0, %v193_v0  ;;  %v186_v2 = vld [vmem:[%s248_s1 + $0x8] sm:$0xff]   ;;  %v187_v3 = vld [vmem:[%s248_s1 + $0x10] sm:$0xff]  }
   0x2   :  { %164 = vmatpush3.bf16.msra.mxu0 %v185_v1  ;;  %v188_v4 = vld [vmem:[%s248_s1 + $0x18] sm:$0xff]   ;;  %v189_v5 = vld [vmem:[%s248_s1 + $0x20] sm:$0xff]   ;;  %v190_v6 = vld [vmem:[%s248_s1 + $0x28] sm:$0xff]  }
   0x3   :  { %165 = vmatprep.subr.bf16.mxu0 %v193_v0  ;;  %v191_v7 = vld [vmem:[%s248_s1 + $0x30] sm:$0xff]   ;;  %v192_v8 = vld [vmem:[%s248_s1 + $0x38] sm:$0xff]   ;;  %v21_v9 = vld [vmem:[%s249_s0] sm:$0xf] }
   0x4   :  { %v153_v10 = vld [vmem:[%s250_s2] ss:$0 sm:$0xff] }
   0x6   :  { %166 = vmatpush3.bf16.msra.mxu0 %v186_v2 }
   0x7   :  { %167 = vmatprep.subr.bf16.mxu0 %v193_v0 }
   0xa   :  { %168 = vmatpush3.bf16.msra.mxu0 %v187_v3 }
   0xb   :  { %169 = vmatprep.subr.bf16.mxu0 %v193_v0 }
   0xe   :  { %170 = vmatpush3.bf16.msra.mxu0 %v188_v4 }
   0xf   :  { %171 = vmatprep.subr.bf16.mxu0 %v193_v0 }
  0x12   :  { %172 = vmatpush3.bf16.msra.mxu0 %v189_v5 }
  0x13   :  { %173 = vmatprep.subr.bf16.mxu0 %v193_v0 }
  0x16   :  { %174 = vmatpush3.bf16.msra.mxu0 %v190_v6 }
  0x17   :  { %175 = vmatprep.subr.bf16.mxu0 %v193_v0 }
  0x1a   :  { %176 = vmatpush3.bf16.msra.mxu0 %v191_v7 }
  0x1b   :  { %177 = vmatprep.subr.bf16.mxu0 %v193_v0 }
  0x1e   :  { %178 = vmatpush3.bf16.msra.mxu0 %v192_v8 }
  0x21   :  { %180 = vmatmul.mubr.bf16.vlgmr.msra.gmra.mrb[0].mxu0 %v21_v9 }
  0xf4   :  { %v120_v11 = vpop.f32.mrb[0].mxu0 }
  0xf5   :  { %v139_v12 = vadd.f32 %v153_v10, %v120_v11  ;;  %v181_v13 = vpop.f32.mrb[1].mxu0 }
  0xf6   :  { %v123_v14 = vpop.f32.mrb[2].mxu0 }
  0xf7   :  { %140 = vst [vmem:[%s251_s3] sm:$0xff] %v139_v12  ;;  %v182_v15 = vpop.f32.mrb[3].mxu0 }

</bundles_post_ra>
